<compile_context>
chip_gen: v5e
topology: v5e:2x2
jax: 0.10.0
libtpu: 0.0.40
codegen_flags: <defaults>
</compile_context>

<pallas_src>
import functools

import jax
import jax.numpy as jnp
from jax.experimental import pallas as pl
from jax.experimental.pallas import tpu as pltpu


# ----------------------------------------------------------------------------
# Kernel 1: bilinear 2x upsample (align_corners=True), one (batch, channel)
# plane per grid step, two tiny 2D MXU matmuls (no Kronecker weights).
# ----------------------------------------------------------------------------
def _upsample_kernel(x_ref, a_ref, bwt_ref, o_ref):
    # x: (1, H1, W1), a: (H2, H1), bwt: (W1, W2) -> o: (1, H2, W2)
    t = jnp.dot(a_ref[...], x_ref[0], preferred_element_type=jnp.float32)
    o_ref[0] = jnp.dot(t, bwt_ref[...], preferred_element_type=jnp.float32)


def _interp_matrix(n_out, n_in):
    """Row-stochastic bilinear interpolation matrix, align_corners=True."""
    if n_in == 1:
        return jnp.ones((n_out, 1), jnp.float32)
    pos = jnp.arange(n_out, dtype=jnp.float32) * (n_in - 1) / (n_out - 1)
    lo = jnp.clip(jnp.floor(pos).astype(jnp.int32), 0, n_in - 2)
    frac = pos - lo.astype(jnp.float32)
    m = jnp.zeros((n_out, n_in), jnp.float32)
    m = m.at[jnp.arange(n_out), lo].add(1.0 - frac)
    m = m.at[jnp.arange(n_out), lo + 1].add(frac)
    return m


def bilinear_up2x_nchw(x):
    """(B, C, H1, W1) -> (B, C, 2H1, 2W1), bilinear, align_corners=True."""
    b, c, h1, w1 = x.shape
    h2, w2 = 2 * h1, 2 * w1
    a = _interp_matrix(h2, h1)              # (H2, H1)
    bwt = _interp_matrix(w2, w1).T          # (W1, W2)
    xf = x.reshape(b * c, h1, w1).astype(jnp.float32)
    out = pl.pallas_call(
        _upsample_kernel,
        out_shape=jax.ShapeDtypeStruct((b * c, h2, w2), jnp.float32),
        grid=(b * c,),
        in_specs=[
            pl.BlockSpec((1, h1, w1), lambda i: (i, 0, 0)),
            pl.BlockSpec((h2, h1), lambda i: (0, 0)),
            pl.BlockSpec((w1, w2), lambda i: (0, 0)),
        ],
        out_specs=pl.BlockSpec((1, h2, w2), lambda i: (i, 0, 0)),
        compiler_params=pltpu.CompilerParams(dimension_semantics=("parallel",)),
    )(xf, a, bwt)
    return out.reshape(b, c, h2, w2)


# ----------------------------------------------------------------------------
# Kernel 2 (fused): hist_skip (1x1 conv with E folded + RBF histogram +
# per-channel bin norm + stride-1 avg pool, count_include_pad=False)
# followed by DoubleConv = (3x3 conv -> ReLU -> GroupNorm(1, C)) x 2.
# Activations live as (C, H*W): channels on sublanes, space on lanes.
# ----------------------------------------------------------------------------
def _hist_dconv_kernel(x2_ref, x1_ref, wet_ref, bet_ref, wid_ref, cen_ref,
                       s_ref, w1_ref, b1_ref, g1_ref, be1_ref,
                       w2_ref, b2_ref, g2_ref, be2_ref, o_ref, *, H, W, pad):
    f32 = jnp.float32
    hw = H * W

    # Spatial coordinates of each lane (flattened y*W + x).
    ii = jax.lax.broadcasted_iota(jnp.int32, (1, hw), 1)
    xx = ii % W
    yy = ii // W

    def shift(v, off):
        # u[:, p] = v[:, p + off]   (wraps; out-of-image taps are masked out)
        if off == 0:
            return v
        return pltpu.roll(v, shift=(-off) % hw, axis=1)

    def valid(dy, dx):
        okx = jnp.logical_and(xx + dx >= 0, xx + dx <= W - 1)
        oky = jnp.logical_and(yy + dy >= 0, yy + dy <= H - 1)
        return jnp.logical_and(okx, oky).astype(f32)

    # ---- hist skip: 1x1 conv (E + bias pre-folded on host) + RBF histogram
    x2 = x2_ref[0]                                              # (C2, HW)
    ye = jnp.dot(wet_ref[...], x2,
                 preferred_element_type=f32) + bet_ref[...]     # (C3, HW)
    z = jnp.exp(-jnp.square(wid_ref[...] * (ye + cen_ref[...])))
    # per-channel bin normalisation (S sums bins within a channel group)
    bsum = jnp.dot(s_ref[...], z, preferred_element_type=f32) + 1e-5
    zn = z * pl.reciprocal(bsum)

    # ---- stride-1 avg pool, zero padding, count_include_pad=False.
    # Separable roll+mask adds; divisor computed from validity counts.
    row = zn
    for dx in range(-pad, pad + 1):
        if dx == 0:
            continue
        mx = jnp.logical_and(xx + dx >= 0, xx + dx <= W - 1).astype(f32)
        row = row + mx * shift(zn, dx)
    col = row
    for dy in range(-pad, pad + 1):
        if dy == 0:
            continue
        my = jnp.logical_and(yy + dy >= 0, yy + dy <= H - 1).astype(f32)
        col = col + my * shift(row, dy * W)
    cx = jnp.ones((1, hw), f32)
    cy = jnp.ones((1, hw), f32)
    for d in range(1, pad + 1):
        cx = cx + (xx - d >= 0).astype(f32) + (xx + d <= W - 1).astype(f32)
        cy = cy + (yy - d >= 0).astype(f32) + (yy + d <= H - 1).astype(f32)
    x3 = col * pl.reciprocal(cx * cy)                           # (C3, HW)

    x1 = x1_ref[0]                                              # (C1, HW)

    # ---- DoubleConv: each 3x3 conv is one im2col matmul; the [x3, x1]
    # concat order is realised by stacking taps straight into the slab.
    def conv3x3_relu_gn(pieces, w_ref, b_ref, g_ref, be_ref):
        taps = []
        for ky in range(3):
            for kx in range(3):
                dy, dx = ky - 1, kx - 1
                m = valid(dy, dx)
                off = dy * W + dx
                for src in pieces:
                    taps.append(m * shift(src, off))
        slab = jnp.concatenate(taps, axis=0)                    # (9*Cin, HW)
        v = jnp.dot(w_ref[...], slab,
                    preferred_element_type=f32) + b_ref[...]    # (Cout, HW)
        v = jnp.maximum(v, 0.0)                                 # ReLU
        # GroupNorm(1, C): single-pass stats over all channels & pixels.
        mu = jnp.mean(v)
        var = jnp.mean(v * v) - mu * mu
        return (v - mu) * jax.lax.rsqrt(var + 1e-5) * g_ref[...] + be_ref[...]

    h1 = conv3x3_relu_gn([x3, x1], w1_ref, b1_ref, g1_ref, be1_ref)
    o_ref[0] = conv3x3_relu_gn([h1], w2_ref, b2_ref, g2_ref, be2_ref)


def hist_double_conv(x2f, x1f, p, *, H, W, pad):
    b, c2, hw = x2f.shape
    c1 = x1f.shape[1]
    cout = p['w2f'].shape[0]
    kern = functools.partial(_hist_dconv_kernel, H=H, W=W, pad=pad)

    def full2(shape):
        return pl.BlockSpec(shape, lambda i: (0, 0))

    return pl.pallas_call(
        kern,
        out_shape=jax.ShapeDtypeStruct((b, cout, hw), jnp.float32),
        grid=(b,),
        in_specs=[
            pl.BlockSpec((1, c2, hw), lambda i: (i, 0, 0)),
            pl.BlockSpec((1, c1, hw), lambda i: (i, 0, 0)),
            full2(p['wet'].shape), full2(p['bet'].shape),
            full2(p['widths'].shape), full2(p['centers'].shape),
            full2(p['S'].shape),
            full2(p['w1f'].shape), full2(p['b1'].shape),
            full2(p['g1'].shape), full2(p['be1'].shape),
            full2(p['w2f'].shape), full2(p['b2'].shape),
            full2(p['g2'].shape), full2(p['be2'].shape),
        ],
        out_specs=pl.BlockSpec((1, cout, hw), lambda i: (i, 0, 0)),
        compiler_params=pltpu.CompilerParams(dimension_semantics=("parallel",)),
    )(x2f, x1f, p['wet'], p['bet'], p['widths'], p['centers'], p['S'],
      p['w1f'], p['b1'], p['g1'], p['be1'],
      p['w2f'], p['b2'], p['g2'], p['be2'])


# ----------------------------------------------------------------------------
# Parameter setup (deterministic, synthetic) and the full UpHist forward.
# ----------------------------------------------------------------------------
def init_params(key, in_channels, out_channels, num_bins):
    c_hist = out_channels // num_bins        # 1x1 conv output channels
    c3 = c_hist * num_bins                   # histogram output channels
    cin = in_channels                        # conv1 input = concat([x3, x1])
    cmid = in_channels // 2
    cout = out_channels // 2
    ks = jax.random.split(key, 8)
    p = {}

    # hist_skip 1x1 conv (C2 -> c_hist) and bin-structure matrices.
    w1x1 = jax.random.normal(ks[0], (out_channels, c_hist),
                             jnp.float32) / jnp.sqrt(float(out_channels))
    b1x1 = jax.random.normal(ks[1], (1, c_hist), jnp.float32) * 0.1
    E = jnp.zeros((c_hist, c3), jnp.float32)    # repeat-interleave to bins
    S = jnp.zeros((c3, c3), jnp.float32)        # within-channel bin sum
    for c in range(c_hist):
        E = E.at[c, c * num_bins:(c + 1) * num_bins].set(1.0)
        S = S.at[c * num_bins:(c + 1) * num_bins,
                 c * num_bins:(c + 1) * num_bins].set(1.0)
    # Fold E + bias into the 1x1 conv; store transposed for (C, HW) layout.
    p['wet'] = (w1x1 @ E).T                     # (c3, out_channels)
    p['bet'] = (b1x1 @ E).T                     # (c3, 1)
    p['S'] = S
    centers = jnp.tile(jnp.linspace(-1.0, 1.0, num_bins, dtype=jnp.float32),
                       (c_hist,))
    p['centers'] = centers[:, None]             # (c3, 1)
    p['widths'] = 1.0 + 0.25 * jax.random.normal(ks[2], (c3, 1), jnp.float32)

    # DoubleConv(in_channels, out_channels//2, mid=in_channels//2).
    # Conv weights generated HWIO (ky, kx, cin, cout) and pre-flattened to
    # (Cout, 9*Cin) with (ky, kx, cin) column ordering to match the im2col
    # slab built in-kernel (cin order = concat([x3, x1])).
    w1 = jax.random.normal(ks[3], (3, 3, cin, cmid),
                           jnp.float32) / jnp.sqrt(9.0 * cin)
    p['w1f'] = w1.reshape(9 * cin, cmid).T
    p['b1'] = jax.random.normal(ks[4], (cmid, 1), jnp.float32) * 0.1
    p['g1'] = jnp.ones((cmid, 1), jnp.float32)
    p['be1'] = jnp.zeros((cmid, 1), jnp.float32)
    w2 = jax.random.normal(ks[5], (3, 3, cmid, cout),
                           jnp.float32) / jnp.sqrt(9.0 * cmid)
    p['w2f'] = w2.reshape(9 * cmid, cout).T
    p['b2'] = jax.random.normal(ks[6], (cout, 1), jnp.float32) * 0.1
    p['g2'] = jnp.ones((cout, 1), jnp.float32)
    p['be2'] = jnp.zeros((cout, 1), jnp.float32)
    return p


def up_hist_forward(x1, x2, params, *, kernel_size, padding):
    """x1, x2 are NCHW (PyTorch convention); returns NCHW."""
    assert kernel_size == 2 * padding + 1, \
        "hist pool geometry must preserve spatial size for the skip concat"
    x1 = x1.astype(jnp.float32)
    x2 = x2.astype(jnp.float32)
    b, c1, _, _ = x1.shape
    _, c2, h, w = x2.shape

    # 1) bilinear 2x upsample (Pallas, per-(batch, channel) grid)
    x1u = bilinear_up2x_nchw(x1)
    # 2) F.pad to x2's spatial size (no-op when x2 is exactly 2x)
    dy = h - x1u.shape[2]
    dx = w - x1u.shape[3]
    if dy or dx:
        x1u = jnp.pad(x1u, ((0, 0), (0, 0),
                            (dy // 2, dy - dy // 2),
                            (dx // 2, dx - dx // 2)))

    # Channels-on-sublanes / space-on-lanes layout: free reshapes from NCHW.
    x2f = x2.reshape(b, c2, h * w)
    x1f = x1u.reshape(b, c1, h * w)

    # 3)+4) fused hist_skip + concat([x3, x1]) + DoubleConv in one kernel
    out = hist_double_conv(x2f, x1f, params, H=h, W=w, pad=padding)
    return out.reshape(b, out.shape[1], h, w)


if __name__ == "__main__":
    # UpHist(in_channels=16, out_channels=8, num_bins=4, bilinear=True,
    #        kernel_size=3, padding=1)
    in_channels, out_channels, num_bins = 16, 8, 4
    kernel_size, padding = 3, 1
    B, H1, W1 = 2, 8, 8
    H, W = 2 * H1, 2 * W1

    key = jax.random.PRNGKey(0)
    k1, k2, kp = jax.random.split(key, 3)
    x1 = jax.random.normal(k1, (B, in_channels // 2, H1, W1), jnp.float32)
    x2 = jax.random.normal(k2, (B, out_channels, H, W), jnp.float32)
    params = init_params(kp, in_channels, out_channels, num_bins)

    out = up_hist_forward(x1, x2, params,
                          kernel_size=kernel_size, padding=padding)
    jax.block_until_ready(out)
    assert out.shape == (B, out_channels // 2, H, W), out.shape
    assert bool(jnp.all(jnp.isfinite(out)))
    print("KERNEL_OK")
</pallas_src>

<mosaic_0001>
module attributes {stable_mosaic.version = 11 : i64} {
  func.func @_upsample_kernel(%arg0: i32, %arg1: memref<1x8x8xf32, #tpu.memory_space<vmem>>, %arg2: memref<16x8xf32, #tpu.memory_space<vmem>>, %arg3: memref<8x16xf32, #tpu.memory_space<vmem>>, %arg4: memref<1x16x16xf32, #tpu.memory_space<vmem>>) attributes {dimension_semantics = [#tpu.dimension_semantics<parallel>], iteration_bounds = array<i64: 16>, scalar_prefetch = 0 : i64, scratch_operands = 0 : i64, tpu.core_type = #tpu.core_type<tc>, window_params = [{transform_indices = @transform_0, window_bounds = array<i64: 1, 8, 8>}, {pipeline_mode = #tpu.pipeline_mode<synchronous>, transform_indices = @transform_1, window_bounds = array<i64: 16, 8>}, {pipeline_mode = #tpu.pipeline_mode<synchronous>, transform_indices = @transform_2, window_bounds = array<i64: 8, 16>}, {transform_indices = @transform_3, window_bounds = array<i64: 1, 16, 16>}]} {
    %c0 = arith.constant 0 : index
    %c0_0 = arith.constant 0 : index
    %0 = vector.load %arg2[%c0, %c0_0] : memref<16x8xf32, #tpu.memory_space<vmem>>, vector<16x8xf32>
    %c0_1 = arith.constant 0 : index
    %c0_2 = arith.constant 0 : index
    %c0_3 = arith.constant 0 : index
    %1 = vector.load %arg1[%c0_1, %c0_2, %c0_3] : memref<1x8x8xf32, #tpu.memory_space<vmem>>, vector<1x8x8xf32>
    %2 = vector.shape_cast %1 : vector<1x8x8xf32> to vector<8x8xf32>
    %cst = arith.constant dense<0.000000e+00> : vector<16x8xf32>
    %3 = tpu.matmul %0, %2, %cst {dimension_numbers = #tpu.dot_dimension_numbers<[1], [0], [0], [1], [0, 0, 1, 1], [], []>} : vector<16x8xf32>, vector<8x8xf32>, vector<16x8xf32> -> vector<16x8xf32>
    %c0_4 = arith.constant 0 : index
    %c0_5 = arith.constant 0 : index
    %4 = vector.load %arg3[%c0_4, %c0_5] : memref<8x16xf32, #tpu.memory_space<vmem>>, vector<8x16xf32>
    %cst_6 = arith.constant dense<0.000000e+00> : vector<16x16xf32>
    %5 = tpu.matmul %3, %4, %cst_6 {dimension_numbers = #tpu.dot_dimension_numbers<[1], [0], [0], [1], [0, 0, 1, 1], [], []>} : vector<16x8xf32>, vector<8x16xf32>, vector<16x16xf32> -> vector<16x16xf32>
    %c0_7 = arith.constant 0 : index
    %c0_8 = arith.constant 0 : index
    %c0_9 = arith.constant 0 : index
    %6 = vector.load %arg4[%c0_7, %c0_8, %c0_9] : memref<1x16x16xf32, #tpu.memory_space<vmem>>, vector<1x16x16xf32>
    %7 = vector.shape_cast %6 : vector<1x16x16xf32> to vector<16x16xf32>
    %8 = vector.shape_cast %5 : vector<16x16xf32> to vector<1x16x16xf32>
    tpu.vector_store %arg4[%c0_7, %c0_8, %c0_9], %8 {strides = array<i32>} : memref<1x16x16xf32, #tpu.memory_space<vmem>>, vector<1x16x16xf32>,
    return
  }
  func.func @transform_0(%arg0: i32) -> (i32, i32, i32) {
    %c0_i32 = arith.constant 0 : i32
    %c0_i32_0 = arith.constant 0 : i32
    %c0_i32_1 = arith.constant 0 : i32
    return %arg0, %c0_i32, %c0_i32_0 : i32, i32, i32
  }
  func.func @transform_1(%arg0: i32) -> (i32, i32) {
    %c0_i32 = arith.constant 0 : i32
    %c0_i32_0 = arith.constant 0 : i32
    %c0_i32_1 = arith.constant 0 : i32
    return %c0_i32, %c0_i32_0 : i32, i32
  }
  func.func @transform_2(%arg0: i32) -> (i32, i32) {
    %c0_i32 = arith.constant 0 : i32
    %c0_i32_0 = arith.constant 0 : i32
    %c0_i32_1 = arith.constant 0 : i32
    return %c0_i32, %c0_i32_0 : i32, i32
  }
  func.func @transform_3(%arg0: i32) -> (i32, i32, i32) {
    %c0_i32 = arith.constant 0 : i32
    %c0_i32_0 = arith.constant 0 : i32
    %c0_i32_1 = arith.constant 0 : i32
    return %arg0, %c0_i32, %c0_i32_0 : i32, i32, i32
  }
}

</mosaic_0001>

<bundles_post_ra>
// kernel: tpu_custom_call.1
= control target key start
LH: loop header
LB: loop body
LE: loop exit
PB: predicated region body
PF: predicated region fallthrough
CT: control target
= control target key end

     0   :  { %8 = vsyncpa [#allocation3], 0  ;;  %s549_s0 = inlined_call_operand.vmem [shape: f32[16,8,8], index: 0, kind: input, shape index: {}]   ;;  %s550_s1 = inlined_call_operand.vmem [shape: f32[16,8], index: 1, kind: input, shape index: {}]   ;;  %s551_s2 = inlined_call_operand.vmem [shape: f32[8,16], index: 2, kind: input, shape index: {}]   ;;  %s552_s3 = inlined_call_operand.hbm [shape: f32[16,16,16], index: 3, kind: output, shape index: {}]  }
   0x1   :  { %10 = vsyncpa [#allocation3 + $0x1], 0  ;;  %s455_s12 = smov 0   ;;  %s457_s13 = smov 0  }
   0x2   :  { %s459_s14 = smov 0   ;;  %s461_s15 = smov 0  }
   0x3 LB: > { %s476_s16 = sadd.s32 4294967295, %s431_s15   ;;  %s310_s17 = sadd.s32 4294967294, %s431_s15   ;;  %s431_s15 = sphi %s461_s15, %s558_s15   ;;  %s427_s14 = sphi %s459_s14, %s557_s14   ;;  %s423_s13 = sphi %s457_s13, %s556_s13   ;;  %s419_s12 = sphi %s455_s12, %s555_s12  }
   0x4   : > { %s480_s18 = sadd.s32 1, %s431_s15   ;;  %s91_s19 = sadd.s32 1, %s427_s14 }
   0x5   : > { %s88_s20 = ssub.s32 %s431_s15, %s480_s18  ;;  %p101_p0 = scmp.ne.s32.totalorder %s427_s14, %s423_s13 }
   0x6   : > { %p89_p1 = scmp.eq.s32.totalorder %s88_s20, 0  ;;  %p102_p2 = scmp.eq.s32.totalorder %s476_s16, 15 }
   0x7   : > { %p107_p3 = scmp.ne.s32.totalorder %s423_s13, %s419_s12  ;;  %p108_p4 = scmp.eq.s32.totalorder %s310_s17, 15 }
   0x8   : > { %s491_s21 = scalar_select %p89_p1, %s427_s14, %s91_s19  }
   0x9   : > { %p493_p5 = por %p102_p2, %p101_p0  ;;  %p497_p6 = por %p108_p4, %p107_p3 }
   0xa   : > { %p313_p7 = scmp.ge.s32.totalorder %s431_s15, 1  ;;  %p139_p8 = scmp.lt.s32.totalorder %s431_s15, 17 }
   0xc   : > { %p140_p9 = pnand %p313_p7, %p139_p8 }
   0xd   : > { %p162_p10 = scmp.lt.s32.totalorder (!%p140_p9), %s476_s16, 15  ;;  %s159_s8 = sand.u32 (!%p140_p9), 1, %s423_s13  }
   0xe   : > { %143 = sbr.rel (%p140_p9) target bundleno = 293 (0x125), region = 32  ;;  %s314_s9 = sshll.u32 (!%p140_p9), %s159_s8, 4 }
   0xf   : > { %s161_s10 = scalar_lea.vmem (!%p140_p9), [#allocation2], %s314_s9  ;;  %s325_s11 = sshll.u32 (!%p140_p9), %s476_s16, 4 }
  0x10   : > { %s244_s20 = scalar_lea.hbm (!%p140_p9), %s552_s3, %s325_s11  ;;  %s233_s26 = scalar_lea.sflag (!%p140_p9), [#allocation3], %s159_s8 }
  0x11   : > { %s389_s30 = scalar_lea.hbm (!%p140_p9), %s552_s3, 256 }
  0x13   : > { %s163_s24 = scalar_select %p162_p10, %s476_s16, 15  ;;  %v167_v0 = vld [vmem:[%s550_s1 + $0x8] sm:$0xff]  ;;  %vm169_vm0 = vcmask 64512   ;;  %v166_v1 = vld [vmem:[%s550_s1] sm:$0xff]  ;;  %vm229_vm1 = vcmask 130048  }
  0x14   : > { %v199_v3 = vld [vmem:[%s551_s2] sm:$0xff] }
  0x15   : > { %s315_s25 = sshll.u32 %s163_s24, 3  ;;  %327 = vmatpush.msra.mxu3 %v199_v3  ;;  %221 = vmatpush.msra.mxu1 %v199_v3  ;;  %s245_s24 = sshll.u32 %s161_s10, 4  ;;  %s246_s24 = int_to_ptr.vmem [resolvable:$true] %s245_s24 }
  0x16   : > { %s165_s28 = scalar_lea.vmem %s549_s0, %s315_s25  ;;  %s247_s25 = sshll.u32 %s244_s20, 4  ;;  %s248_s25 = int_to_ptr.hbm [resolvable:$true] %s247_s25 }
  0x17   : > { %v168_v2 = vld [vmem:[%s165_s28] sm:$0xff]  ;;  %s383_s27 = sshra.s32 %s248_s25, 4  ;;  %s384_s27 = int_to_ptr.hbm [resolvable:$true] %s383_s27 }
  0x18   : > { %326 = vmatpush.msra.mxu2 %v168_v2  ;;  %191 = vmatpush.msra.mxu0 %v168_v2  ;;  %s385_s28 = scalar_lea.hbm %s384_s27, 16  ;;  %p390_p0 = scmp.lt.s32.totalorder %s384_s27, %s552_s3 }
  0x19   : > { %317 = vmatmul.msk.f32.vlgmr.msra.gmra.mxu2 %vm169_vm0, %v167_v0  ;;  %316 = vmatmul.msk.f32.vlgmr.msra.gmra.mxu0 %vm169_vm0, %v166_v1  ;;  %p386_p11 = scmp.ne.s32.totalorder %s384_s27, %s385_s28  ;;  %p391_p1 = scmp.lt.s32.totalorder %s389_s30, %s385_s28 }
  0x1b   : > { %p387_p12 = pnand %p386_p11, %p493_p5  ;;  %p392_p2 = por %p391_p1, %p390_p0 }
  0x1d   : > { %p388_p13 = pneg %p387_p12 }
  0x1f   : > { %p393_p3 = pnand %p392_p2, %p388_p13 }
  0x96   : > { %v193_v4 = vpop.f32.mrf.mxu0 }
  0x97   : > { %318 = vmatmul.msk.f32.vlgmr.msra.gmra.mxu1 %vm169_vm0, %v193_v4 }
  0x9c   : > { %v196_v5 = vpop.f32.mrf.mxu2 }
  0x9d   : > { %319 = vmatmul.msk.f32.vlgmr.msra.gmra.mxu3 %vm169_vm0, %v196_v5 }
 0x114   : > { %v223_v6 = vpop.f32.mrf.mxu1 }
 0x115   : > { %230 = vst.msk [vmem:[%s161_s10] sm:$0xff] %vm229_vm1, %v223_v6 }
 0x120   : > { %v226_v7 = vpop.f32.mrf.mxu3 }
 0x121   : > { %231 = vst.msk [vmem:[%s161_s10 + $0x8] sm:$0xff] %vm229_vm1, %v226_v7 }
 0x122   : > { %396 = shalt.err (!%p393_p3)
}
 0x123   : > { %s433_s6 = smov 128   ;;  %s434_s7 = smov 8  }
 0x124   : > { %328 = dma.vmem_to_hbm [thread:$0]  (%p493_p5), %s246_s24, 256, %s248_s25, %s233_s26, %s433_s6, %s433_s6, %s434_s7  }
 0x125 PF: > { %p334_p4 = scmp.ge.s32.totalorder %s431_s15, 2  ;;  %s262_s8 = sand.u32 1, %s419_s12  }
 0x126   : > { %s263_s9 = scalar_lea.sflag [#allocation3], %s262_s8 }
 0x127   : > { %p331_p7 = pnand %p334_p4, %p497_p6 }
 0x129   : > { %p332_p8 = pneg %p331_p7 }
 0x12b   : > { %414 = dma.done.wait (%p332_p8), %s263_s9, 256  }
 0x12c   : > { %416 = vsyncadd (%p332_p8), %s263_s9, 4294967040  ;;  %p13_p9 = scmp.ge.s32.totalorder %s480_s18, 18   ;;  %s555_s12 = smov %s423_s13 }
 0x12d   : > { %s556_s13 = smov %s427_s14  ;;  %s557_s14 = smov %s491_s21 }
 0x12e   : > { %s558_s15 = smov %s480_s18  ;;  %15 = sbr.rel (!%p13_p9) target bundleno = 3 (0x3), region = 67 }
 0x133   :  { %269 = vsyncpa [#allocation3], 1 }
 0x134   :  { %271 = vsyncpa [#allocation3 + $0x1], 1 }

</bundles_post_ra>
